<compile_context>
chip_gen: v5e
topology: v5e:2x2
jax: 0.10.0
libtpu: 0.0.40
codegen_flags: <defaults>
</compile_context>

<pallas_src>
import jax
import jax.numpy as jnp
from jax.experimental import pallas as pl
from jax.experimental.pallas import tpu as pltpu


def temporal_attention_kernel(hs_ref, w1_ref, b1_ref, w2_ref, b2_ref,
                              gamma_ref, beta_ref,
                              ctx_ref, attn_ref):
    """One block of BB batch elements per grid step.

    hs_ref:   (BB, S, H) VMEM
    w1_ref:   (H, A)     VMEM   first Linear weight (x @ w1 + b1)
    b1_ref:   (1, A)     VMEM
    w2_ref:   (1, A)     VMEM   second Linear weight, stored as a row vector
    b2_ref:   (1,)       SMEM   second Linear bias (scalar)
    gamma_ref/beta_ref: (1, H) LayerNorm affine params
    ctx_ref:  (BB, H)    output context
    attn_ref: (BB, S)    output attention weights
    """
    bb, s, hdim = hs_ref.shape
    a = w1_ref.shape[1]

    h = hs_ref[...]                                        # (BB, S, H) f32

    # ---- projection 1: Linear(H->A) + tanh (single MXU matmul, batch folded into rows) ----
    hm = h.reshape(bb * s, hdim)                           # (BB*S, H)
    p = jnp.tanh(
        jnp.dot(hm, w1_ref[...], preferred_element_type=jnp.float32)
        + b1_ref[...]
    )                                                      # (BB*S, A)

    # ---- projection 2: Linear(A->1) as VPU multiply + lane reduction (no MXU) ----
    p3 = p.reshape(bb, s, a)                               # (BB, S, A)
    scores = jnp.sum(p3 * w2_ref[...], axis=-1) + b2_ref[0]  # (BB, S), S on lanes

    # ---- softmax over the sequence axis (lane axis) ----
    m = jnp.max(scores, axis=-1, keepdims=True)            # (BB, 1)
    e = jnp.exp(scores - m)                                # (BB, S)  (EUP)
    denom = jnp.sum(e, axis=-1, keepdims=True)             # (BB, 1)
    r = pl.reciprocal(denom, approx=True)                  # EUP vrcp (otherwise idle slot)
    r = r * (2.0 - denom * r)                              # one Newton step -> f32-exact
    attn = e * r                                           # (BB, S)
    attn_ref[...] = attn                                   # already (BB,S) -> no transpose

    # ---- context = attention-weighted sum over time (VPU mul + sublane reduce) ----
    ctx = jnp.sum(attn[:, :, None] * h, axis=1)            # (BB, H)

    # ---- LayerNorm over hidden dim ----
    mu = jnp.mean(ctx, axis=-1, keepdims=True)
    xc = ctx - mu
    var = jnp.mean(xc * xc, axis=-1, keepdims=True)
    inv = jax.lax.rsqrt(var + 1e-5)
    ctx_ref[...] = xc * inv * gamma_ref[...] + beta_ref[...]


def temporal_attention(hidden_states, params, *, block_b=8):
    """hidden_states: (B, S, H) float32. Returns (context (B,H), attention (B,S))."""
    B, S, H = hidden_states.shape
    A = params["w1"].shape[1]

    # Batch block: fill the 8-sublane vreg; keep >=2 grid steps when B allows
    # (v7x has 2 TensorCores, sharded via the "parallel" grid axis).
    BB = min(block_b, B)
    Bp = pl.cdiv(B, BB) * BB
    hs = hidden_states.astype(jnp.float32)
    if Bp != B:
        hs = jnp.pad(hs, ((0, Bp - B), (0, 0), (0, 0)))

    w1 = params["w1"].astype(jnp.float32)                      # (H, A)
    b1 = params["b1"].reshape(1, A).astype(jnp.float32)        # (1, A)
    w2 = params["w2"].reshape(1, A).astype(jnp.float32)        # (1, A)  (was (A, 1))
    b2 = params["b2"].reshape(1).astype(jnp.float32)           # (1,) -> SMEM scalar
    gamma = params["gamma"].reshape(1, H).astype(jnp.float32)  # (1, H)
    beta = params["beta"].reshape(1, H).astype(jnp.float32)    # (1, H)

    full2 = lambda b: (0, 0)

    ctx, attn = pl.pallas_call(
        temporal_attention_kernel,
        out_shape=(
            jax.ShapeDtypeStruct((Bp, H), jnp.float32),
            jax.ShapeDtypeStruct((Bp, S), jnp.float32),
        ),
        grid_spec=pltpu.PrefetchScalarGridSpec(
            num_scalar_prefetch=0,
            grid=(Bp // BB,),
            in_specs=[
                pl.BlockSpec((BB, S, H), lambda b: (b, 0, 0)),
                pl.BlockSpec((H, A), full2),
                pl.BlockSpec((1, A), full2),
                pl.BlockSpec((1, A), full2),
                pl.BlockSpec(memory_space=pltpu.MemorySpace.SMEM),  # b2 scalar
                pl.BlockSpec((1, H), full2),
                pl.BlockSpec((1, H), full2),
            ],
            out_specs=[
                pl.BlockSpec((BB, H), lambda b: (b, 0)),
                pl.BlockSpec((BB, S), lambda b: (b, 0)),
            ],
        ),
        compiler_params=pltpu.CompilerParams(
            dimension_semantics=("parallel",),
        ),
    )(hs, w1, b1, w2, b2, gamma, beta)

    if Bp != B:
        ctx = ctx[:B]
        attn = attn[:B]
    return ctx, attn


def temporal_attention_ref(hidden_states, params):
    """Pure-JAX reference for correctness checking."""
    h = hidden_states
    p = jnp.tanh(h @ params["w1"] + params["b1"])
    scores = (p @ params["w2"] + params["b2"]).squeeze(-1)          # (B, S)
    attn = jax.nn.softmax(scores, axis=1)
    ctx = jnp.einsum("bs,bsh->bh", attn, h)
    mu = ctx.mean(-1, keepdims=True)
    var = ((ctx - mu) ** 2).mean(-1, keepdims=True)
    ctx = (ctx - mu) / jnp.sqrt(var + 1e-5) * params["gamma"] + params["beta"]
    return ctx, attn


if __name__ == "__main__":
    B, S, H, A = 16, 8, 32, 64   # 16 batch rows -> BB=8 per step, 2 grid steps

    key = jax.random.PRNGKey(0)
    k_hs, k_w1, k_b1, k_w2, k_b2 = jax.random.split(key, 5)

    hidden_states = jax.random.normal(k_hs, (B, S, H), dtype=jnp.float32)

    # Deterministic synthetic parameter init (shapes follow nn.Linear / nn.LayerNorm).
    params = {
        "w1": jax.random.normal(k_w1, (H, A), dtype=jnp.float32) * (1.0 / jnp.sqrt(H)),
        "b1": jax.random.normal(k_b1, (A,), dtype=jnp.float32) * 0.01,
        "w2": jax.random.normal(k_w2, (A, 1), dtype=jnp.float32) * (1.0 / jnp.sqrt(A)),
        "b2": jax.random.normal(k_b2, (1,), dtype=jnp.float32) * 0.01,
        "gamma": jnp.ones((H,), dtype=jnp.float32),
        "beta": jnp.zeros((H,), dtype=jnp.float32),
    }

    ctx, attn = jax.jit(temporal_attention)(hidden_states, params)
    ctx = jax.block_until_ready(ctx)
    attn = jax.block_until_ready(attn)

    ctx_ref, attn_ref = temporal_attention_ref(hidden_states, params)
    assert ctx.shape == (B, H) and attn.shape == (B, S)
    assert jnp.allclose(ctx, ctx_ref, atol=1e-4, rtol=1e-4)
    assert jnp.allclose(attn, attn_ref, atol=1e-5, rtol=1e-5)

    print("KERNEL_OK")
</pallas_src>

<mosaic_0001>
module attributes {stable_mosaic.version = 11 : i64} {
  func.func @temporal_attention_kernel(%arg0: i32, %arg1: memref<8x8x32xf32, #tpu.memory_space<vmem>>, %arg2: memref<32x64xf32, #tpu.memory_space<vmem>>, %arg3: memref<1x64xf32, #tpu.memory_space<vmem>>, %arg4: memref<1x64xf32, #tpu.memory_space<vmem>>, %arg5: memref<1xf32, #tpu.memory_space<smem>>, %arg6: memref<1x32xf32, #tpu.memory_space<vmem>>, %arg7: memref<1x32xf32, #tpu.memory_space<vmem>>, %arg8: memref<8x32xf32, #tpu.memory_space<vmem>>, %arg9: memref<8x8xf32, #tpu.memory_space<vmem>>) attributes {dimension_semantics = [#tpu.dimension_semantics<parallel>], iteration_bounds = array<i64: 2>, scalar_prefetch = 0 : i64, scratch_operands = 0 : i64, tpu.core_type = #tpu.core_type<tc>, window_params = [{transform_indices = @transform_0, window_bounds = array<i64: 8, 8, 32>}, {pipeline_mode = #tpu.pipeline_mode<synchronous>, transform_indices = @transform_1, window_bounds = array<i64: 32, 64>}, {pipeline_mode = #tpu.pipeline_mode<synchronous>, transform_indices = @transform_2, window_bounds = array<i64: 1, 64>}, {pipeline_mode = #tpu.pipeline_mode<synchronous>, transform_indices = @transform_3, window_bounds = array<i64: 1, 64>}, {transform_indices = @transform_4, window_bounds = array<i64: 1>}, {pipeline_mode = #tpu.pipeline_mode<synchronous>, transform_indices = @transform_5, window_bounds = array<i64: 1, 32>}, {pipeline_mode = #tpu.pipeline_mode<synchronous>, transform_indices = @transform_6, window_bounds = array<i64: 1, 32>}, {transform_indices = @transform_7, window_bounds = array<i64: 8, 32>}, {transform_indices = @transform_8, window_bounds = array<i64: 8, 8>}]} {
    %c0 = arith.constant 0 : index
    %c0_0 = arith.constant 0 : index
    %c0_1 = arith.constant 0 : index
    %0 = vector.load %arg1[%c0, %c0_0, %c0_1] : memref<8x8x32xf32, #tpu.memory_space<vmem>>, vector<8x8x32xf32>
    %1 = vector.shape_cast %0 : vector<8x8x32xf32> to vector<64x32xf32>
    %c0_2 = arith.constant 0 : index
    %c0_3 = arith.constant 0 : index
    %2 = vector.load %arg2[%c0_2, %c0_3] : memref<32x64xf32, #tpu.memory_space<vmem>>, vector<32x64xf32>
    %cst = arith.constant dense<0.000000e+00> : vector<64x64xf32>
    %3 = tpu.matmul %1, %2, %cst {dimension_numbers = #tpu.dot_dimension_numbers<[1], [0], [0], [1], [0, 0, 1, 1], [], []>} : vector<64x32xf32>, vector<32x64xf32>, vector<64x64xf32> -> vector<64x64xf32>
    %c0_4 = arith.constant 0 : index
    %c0_5 = arith.constant 0 : index
    %4 = vector.load %arg3[%c0_4, %c0_5] : memref<1x64xf32, #tpu.memory_space<vmem>>, vector<1x64xf32>
    %5 = vector.broadcast %4 : vector<1x64xf32> to vector<64x64xf32>
    %6 = arith.addf %3, %5 : vector<64x64xf32>
    %7 = math.tanh %6 : vector<64x64xf32>
    %8 = vector.shape_cast %7 : vector<64x64xf32> to vector<8x8x64xf32>
    %c0_6 = arith.constant 0 : index
    %c0_7 = arith.constant 0 : index
    %9 = vector.load %arg4[%c0_6, %c0_7] : memref<1x64xf32, #tpu.memory_space<vmem>>, vector<1x64xf32>
    %10 = vector.shape_cast %9 : vector<1x64xf32> to vector<1x1x64xf32>
    %11 = vector.broadcast %10 : vector<1x1x64xf32> to vector<8x8x64xf32>
    %12 = arith.mulf %8, %11 : vector<8x8x64xf32>
    %cst_8 = arith.constant dense<0.000000e+00> : vector<8x8xf32>
    %13 = vector.multi_reduction <add>, %12, %cst_8 [2] : vector<8x8x64xf32> to vector<8x8xf32>
    %c0_9 = arith.constant 0 : index
    %14 = memref.load %arg5[%c0_9] : memref<1xf32, #tpu.memory_space<smem>>
    %15 = vector.broadcast %14 : f32 to vector<8x8xf32>
    %16 = arith.addf %13, %15 : vector<8x8xf32>
    %cst_10 = arith.constant dense<0xFF800000> : vector<8xf32>
    %17 = vector.multi_reduction <maximumf>, %16, %cst_10 [1] : vector<8x8xf32> to vector<8xf32>
    %18 = vector.shape_cast %17 : vector<8xf32> to vector<8x1xf32>
    %19 = vector.broadcast %18 : vector<8x1xf32> to vector<8x8xf32>
    %20 = arith.subf %16, %19 : vector<8x8xf32>
    %21 = math.exp %20 : vector<8x8xf32>
    %cst_11 = arith.constant dense<0.000000e+00> : vector<8xf32>
    %22 = vector.multi_reduction <add>, %21, %cst_11 [1] : vector<8x8xf32> to vector<8xf32>
    %23 = vector.shape_cast %22 : vector<8xf32> to vector<8x1xf32>
    %24 = tpu.reciprocal %23 {approx = true} : vector<8x1xf32> -> vector<8x1xf32>
    %25 = arith.mulf %23, %24 : vector<8x1xf32>
    %cst_12 = arith.constant 2.000000e+00 : f32
    %26 = vector.broadcast %cst_12 : f32 to vector<8x1xf32>
    %27 = arith.subf %26, %25 : vector<8x1xf32>
    %28 = arith.mulf %24, %27 : vector<8x1xf32>
    %29 = vector.broadcast %28 : vector<8x1xf32> to vector<8x8xf32>
    %30 = arith.mulf %21, %29 : vector<8x8xf32>
    %c0_13 = arith.constant 0 : index
    %c0_14 = arith.constant 0 : index
    %31 = vector.load %arg9[%c0_13, %c0_14] : memref<8x8xf32, #tpu.memory_space<vmem>>, vector<8x8xf32>
    tpu.vector_store %arg9[%c0_13, %c0_14], %30 {strides = array<i32>} : memref<8x8xf32, #tpu.memory_space<vmem>>, vector<8x8xf32>,
    %32 = vector.shape_cast %30 : vector<8x8xf32> to vector<8x8x1xf32>
    %33 = vector.broadcast %32 : vector<8x8x1xf32> to vector<8x8x32xf32>
    %34 = arith.mulf %33, %0 : vector<8x8x32xf32>
    %cst_15 = arith.constant dense<0.000000e+00> : vector<8x32xf32>
    %35 = vector.multi_reduction <add>, %34, %cst_15 [1] : vector<8x8x32xf32> to vector<8x32xf32>
    %cst_16 = arith.constant dense<0.000000e+00> : vector<8xf32>
    %36 = vector.multi_reduction <add>, %35, %cst_16 [1] : vector<8x32xf32> to vector<8xf32>
    %37 = vector.shape_cast %36 : vector<8xf32> to vector<8x1xf32>
    %cst_17 = arith.constant 3.200000e+01 : f32
    %38 = vector.broadcast %cst_17 : f32 to vector<8x1xf32>
    %39 = arith.divf %37, %38 : vector<8x1xf32>
    %40 = vector.broadcast %39 : vector<8x1xf32> to vector<8x32xf32>
    %41 = arith.subf %35, %40 : vector<8x32xf32>
    %42 = arith.mulf %41, %41 : vector<8x32xf32>
    %cst_18 = arith.constant dense<0.000000e+00> : vector<8xf32>
    %43 = vector.multi_reduction <add>, %42, %cst_18 [1] : vector<8x32xf32> to vector<8xf32>
    %44 = vector.shape_cast %43 : vector<8xf32> to vector<8x1xf32>
    %cst_19 = arith.constant 3.200000e+01 : f32
    %45 = vector.broadcast %cst_19 : f32 to vector<8x1xf32>
    %46 = arith.divf %44, %45 : vector<8x1xf32>
    %cst_20 = arith.constant 9.99999974E-6 : f32
    %47 = vector.broadcast %cst_20 : f32 to vector<8x1xf32>
    %48 = arith.addf %46, %47 : vector<8x1xf32>
    %49 = math.rsqrt %48 : vector<8x1xf32>
    %50 = vector.broadcast %49 : vector<8x1xf32> to vector<8x32xf32>
    %51 = arith.mulf %41, %50 : vector<8x32xf32>
    %c0_21 = arith.constant 0 : index
    %c0_22 = arith.constant 0 : index
    %52 = vector.load %arg6[%c0_21, %c0_22] : memref<1x32xf32, #tpu.memory_space<vmem>>, vector<1x32xf32>
    %53 = vector.broadcast %52 : vector<1x32xf32> to vector<8x32xf32>
    %54 = arith.mulf %51, %53 : vector<8x32xf32>
    %c0_23 = arith.constant 0 : index
    %c0_24 = arith.constant 0 : index
    %55 = vector.load %arg7[%c0_23, %c0_24] : memref<1x32xf32, #tpu.memory_space<vmem>>, vector<1x32xf32>
    %56 = vector.broadcast %55 : vector<1x32xf32> to vector<8x32xf32>
    %57 = arith.addf %54, %56 : vector<8x32xf32>
    %c0_25 = arith.constant 0 : index
    %c0_26 = arith.constant 0 : index
    %58 = vector.load %arg8[%c0_25, %c0_26] : memref<8x32xf32, #tpu.memory_space<vmem>>, vector<8x32xf32>
    tpu.vector_store %arg8[%c0_25, %c0_26], %57 {strides = array<i32>} : memref<8x32xf32, #tpu.memory_space<vmem>>, vector<8x32xf32>,
    return
  }
  func.func @transform_0(%arg0: i32) -> (i32, i32, i32) {
    %c0_i32 = arith.constant 0 : i32
    %c0_i32_0 = arith.constant 0 : i32
    %c0_i32_1 = arith.constant 0 : i32
    return %arg0, %c0_i32, %c0_i32_0 : i32, i32, i32
  }
  func.func @transform_1(%arg0: i32) -> (i32, i32) {
    %c0_i32 = arith.constant 0 : i32
    %c0_i32_0 = arith.constant 0 : i32
    %c0_i32_1 = arith.constant 0 : i32
    return %c0_i32, %c0_i32_0 : i32, i32
  }
  func.func @transform_2(%arg0: i32) -> (i32, i32) {
    %c0_i32 = arith.constant 0 : i32
    %c0_i32_0 = arith.constant 0 : i32
    %c0_i32_1 = arith.constant 0 : i32
    return %c0_i32, %c0_i32_0 : i32, i32
  }
  func.func @transform_3(%arg0: i32) -> (i32, i32) {
    %c0_i32 = arith.constant 0 : i32
    %c0_i32_0 = arith.constant 0 : i32
    %c0_i32_1 = arith.constant 0 : i32
    return %c0_i32, %c0_i32_0 : i32, i32
  }
  func.func @transform_4(%arg0: i32) -> i32 {
    %c0_i32 = arith.constant 0 : i32
    %c0_i32_0 = arith.constant 0 : i32
    return %c0_i32 : i32
  }
  func.func @transform_5(%arg0: i32) -> (i32, i32) {
    %c0_i32 = arith.constant 0 : i32
    %c0_i32_0 = arith.constant 0 : i32
    %c0_i32_1 = arith.constant 0 : i32
    return %c0_i32, %c0_i32_0 : i32, i32
  }
  func.func @transform_6(%arg0: i32) -> (i32, i32) {
    %c0_i32 = arith.constant 0 : i32
    %c0_i32_0 = arith.constant 0 : i32
    %c0_i32_1 = arith.constant 0 : i32
    return %c0_i32, %c0_i32_0 : i32, i32
  }
  func.func @transform_7(%arg0: i32) -> (i32, i32) {
    %c0_i32 = arith.constant 0 : i32
    %c0_i32_0 = arith.constant 0 : i32
    return %arg0, %c0_i32 : i32, i32
  }
  func.func @transform_8(%arg0: i32) -> (i32, i32) {
    %c0_i32 = arith.constant 0 : i32
    %c0_i32_0 = arith.constant 0 : i32
    return %arg0, %c0_i32 : i32, i32
  }
}

</mosaic_0001>

<bundles_post_ra>
// kernel: temporal_attention.1
= control target key start
LH: loop header
LB: loop body
LE: loop exit
PB: predicated region body
PF: predicated region fallthrough
CT: control target
= control target key end

     0   :  { %s1704_s0 = inlined_call_operand.hbm [shape: f32[16,8,32], index: 0, kind: input, shape index: {}]   ;;  %s1705_s1 = inlined_call_operand.hbm [shape: f32[32,64], index: 1, kind: input, shape index: {}]   ;;  %s1706_s2 = inlined_call_operand.vmem [shape: f32[1,64], index: 2, kind: input, shape index: {}]   ;;  %s1707_s3 = inlined_call_operand.vmem [shape: f32[1,64], index: 3, kind: input, shape index: {}]   ;;  %s1708_s4 = inlined_call_operand.<no memory space> [shape: f32[1], index: 4, kind: input, shape index: {}]   ;;  %s1709_s5 = inlined_call_operand.vmem [shape: f32[1,32], index: 5, kind: input, shape index: {}]   ;;  %s1710_s6 = inlined_call_operand.vmem [shape: f32[1,32], index: 6, kind: input, shape index: {}]   ;;  %s1711_s7 = inlined_call_operand.hbm [shape: f32[16,32], index: 7, kind: output, shape index: {0}]   ;;  %s1712_s8 = inlined_call_operand.vmem [shape: f32[16,8], index: 8, kind: output, shape index: {1}]  }
   0x1   :  { %1715 = sst [smem:[#allocation12_spill]] %s1705_s1 }
   0x2   :  { %14 = sst [smem:[#allocation2]] %s1708_s4 }
   0x3   :  { %15 = vsyncpa [#allocation4], 0 }
   0x4   :  { %17 = vsyncpa [#allocation4 + $0x1], 0 }
   0x5   :  { %18 = vsyncpa [#allocation7], 0 }
   0x6   :  { %19 = vsyncpa [#allocation5], 0 }
   0x7   :  { %21 = vsyncpa [#allocation5 + $0x1], 0  ;;  %s1396_s29 = smov 0   ;;  %s1398_s30 = smov 0  }
   0x8   :  { %s1400_s9 = smov 0   ;;  %s1402_s10 = smov 0  }
   0x9 LB: > { %s1417_s4 = sadd.s32 4294967295, %s1341_s10   ;;  %s1068_s11 = sadd.s32 4294967294, %s1341_s10   ;;  %s1341_s10 = sphi %s1402_s10, %s1728_s10   ;;  %s1337_s9 = sphi %s1400_s9, %s1727_s9   ;;  %s1333_s30 = sphi %s1398_s30, %s1726_s30   ;;  %s1329_s29 = sphi %s1396_s29, %s1725_s29  }
   0xa   : > { %p47_p0 = scmp.ne.s32.totalorder %s1333_s30, %s1329_s29  ;;  %p48_p1 = scmp.eq.s32.totalorder %s1417_s4, 0 }
   0xb   : > { %p197_p2 = scmp.eq.s32.totalorder %s1417_s4, 1  ;;  %p203_p3 = scmp.eq.s32.totalorder %s1068_s11, 1 }
   0xc   : > { %p1426_p4 = por %p48_p1, %p47_p0  ;;  %p1069_p5 = scmp.ge.s32.totalorder %s1341_s10, 1 }
   0xd   : > { %p1431_p6 = por %p203_p3, %p47_p0  ;;  %p236_p7 = scmp.lt.s32.totalorder %s1341_s10, 3 }
   0xe   : > { %s1718_s1 = sld [smem:[#allocation12_spill]]  ;;  %s1343_s18 = smov [#allocation6]  }
   0xf   : > { %p1439_p8 = pnand %p1069_p5, %p236_p7  ;;  %s249_s19 = sshll.u32 %s1343_s18, 4  ;;  %s250_s19 = int_to_ptr.vmem [resolvable:$true] %s249_s19 }
  0x10   : > { %s1449_s20 = sadd.s32 1, %s1341_s10   ;;  %s1713_s21 = smov 128  }
  0x11   : > { %p1113_p9 = pneg %p1439_p8  ;;  %s1714_s22 = smov 8  }
  0x12   : > { %s31_s23 = ssub.s32 %s1341_s10, %s1449_s20  ;;  %s34_s24 = sadd.s32 1, %s1337_s9 }
  0x13   : > { %p1114_p10 = pnand %p1113_p9, %p48_p1  ;;  %p32_p12 = scmp.eq.s32.totalorder %s31_s23, 0 }
  0x14   : > { %s247_s16 = sshll.u32 %s1718_s1, 4  ;;  %p41_p13 = scmp.ne.s32.totalorder %s1337_s9, %s1333_s30  ;;  %s248_s16 = int_to_ptr.hbm [resolvable:$true] %s247_s16 }
  0x15   : > { %1116 = dma.hbm_to_vmem [thread:$0]  (!%p1114_p10), %s248_s16, 512, %s250_s19, [#allocation7], %s1713_s21, %s1713_s21, %s1714_s22  }
  0x16   : > { %p42_p0 = scmp.eq.s32.totalorder %s1341_s10, 0  ;;  %p1465_p3 = por %p197_p2, %p41_p13 }
  0x17   : > { %s1461_s25 = scalar_select %p32_p12, %s1337_s9, %s34_s24  }
  0x18   : > { %p1126_p5 = scmp.lt.s32.totalorder %s1341_s10, 2  ;;  %s278_s27 = sand.u32 1, %s1337_s9  }
  0x19   : > { %s1092_s28 = sshll.u32 %s1341_s10, 6  ;;  %p43_p7 = por %p42_p0, %p41_p13 }
  0x1a   : > { %s1072_s11 = sshll.u32 %s278_s27, 6  ;;  %s287_s16 = scalar_lea.hbm %s1704_s0, %s1092_s28 }
  0x1b   : > { %s288_s18 = sshll.u32 %s287_s16, 4  ;;  %s282_s19 = scalar_lea.vmem [#allocation3], %s1072_s11  ;;  %s289_s18 = int_to_ptr.hbm [resolvable:$true] %s288_s18 }
  0x1c   : > { %s290_s23 = sshll.u32 %s282_s19, 4  ;;  %p1475_p9 = pnand %p1126_p5, %p43_p7  ;;  %s291_s23 = int_to_ptr.vmem [resolvable:$true] %s290_s23 }
  0x1d   : > { %s279_s21 = scalar_lea.sflag [#allocation4], %s278_s27  ;;  %s1241_s22 = sshra.s32 %s289_s18, 4  ;;  %s1242_s22 = int_to_ptr.hbm [resolvable:$true] %s1241_s22 }
  0x1e   : > { %s1243_s1 = scalar_lea.hbm %s1242_s22, 64  ;;  %p1245_p10 = pneg %p1475_p9 }
  0x1f   : > { %p1244_p2 = scmp.ne.s32.totalorder %s1242_s22, %s1243_s1  ;;  %s1248_s11 = scalar_lea.hbm %s1704_s0, 128 }
  0x20   : > { %p1249_p0 = scmp.lt.s32.totalorder %s1242_s22, %s1704_s0  ;;  %p1250_p5 = scmp.lt.s32.totalorder %s1248_s11, %s1243_s1 }
  0x21   : > { %p1246_p12 = pnand %p1245_p10, %p1244_p2 }
  0x22   : > { %p1251_p7 = por %p1250_p5, %p1249_p0 }
  0x23   : > { %p1247_p13 = pneg %p1246_p12 }
  0x25   : > { %p1252_p11 = pnand %p1251_p7, %p1247_p13 }
  0x27   : > { %1255 = shalt.err (!%p1252_p11)
}
  0x28   : > { %s1722_s27 = smov 8   ;;  %s1723_s19 = smov 128  }
  0x29   : > { %1120 = dma.hbm_to_vmem [thread:$0]  (!%p1475_p9), %s289_s18, 1024, %s291_s23, %s279_s21, %s1723_s19, %s1723_s19, %s1722_s27  }
  0x2a   : > { %302 = sbr.rel (%p1439_p8) target bundleno = 1184 (0x4a0), region = 48  ;;  %s1495_s28 = sand.u32 (!%p1439_p8), 1, %s1333_s30  }
  0x2b   : > { %s1076_s22 = sshll.u32 (!%p1439_p8), %s1495_s28, 6  ;;  %s305_s1 = scalar_lea.sflag (!%p1439_p8), [#allocation4], %s1495_s28 }
  0x2c   : > { %s1499_s14 = scalar_lea.vmem (!%p1439_p8), [#allocation3], %s1076_s22 }
  0x2f   : > { %1316 = dma.done.wait (%p1426_p4), %s305_s1, 1024  }
  0x30   : > { %1318 = vsyncadd (%p1426_p4), %s305_s1, 4294966272 }
  0x31   : > { %1320 = dma.done.wait (%p48_p1), [#allocation7], 512  }
  0x32   : > { %1322 = vsyncadd (%p48_p1), [#allocation7], 4294966784  ;;  %v367_v0 = vld [vmem:[#allocation6 + $0x18] sm:$0xff]  ;;  %v366_v1 = vld [vmem:[#allocation6 + $0x10] sm:$0xff]  ;;  %vm372_vm0 = vcmask 261120   ;;  %vm458_vm1 = vcmask 523264   ;;  %v501_v56 = vlaneseq }
  0x33   : > { %409 = vmatpush.msra.mxu0 %v367_v0  ;;  %1094 = vmatpush.msra.mxu2 %v367_v0  ;;  %v365_v2 = vld [vmem:[#allocation6 + $0x8] sm:$0xff]  ;;  %v364_v3 = vld [vmem:[#allocation6] sm:$0xff]  ;;  %v1516_v6 = vld [vmem:[%s1499_s14 + $0x10] sm:$0xff]  ;;  %s483_s23 = sld [smem:[#allocation2]]  ;;  %vm511_vm2 = vcmask 1041409   ;;  %vm513_vm3 = vcmask 1042434  }
  0x34   : > { %1093 = vmatpush.msra.mxu1 %v367_v0  ;;  %1095 = vmatpush.msra.mxu3 %v367_v0  ;;  %v1510_v4 = vld [vmem:[%s1499_s14] sm:$0xff]  ;;  %v1521_v7 = vld [vmem:[%s1499_s14 + $0x30] sm:$0xff]  ;;  %v1530_v8 = vld [vmem:[%s1499_s14 + $0x8] sm:$0xff]  ;;  %v1563_v58 = vand.u32 127, %v501_v56  ;;  %vm515_vm4 = vcmask 1043459   ;;  %vm517_vm5 = vcmask 1044484  }
  0x35   : > { %410 = vmatpush.msra.mxu0 %v366_v1  ;;  %1097 = vmatpush.msra.mxu2 %v366_v1  ;;  %v1513_v5 = vld [vmem:[%s1499_s14 + $0x20] sm:$0xff]  ;;  %v1533_v9 = vld [vmem:[%s1499_s14 + $0x28] sm:$0xff]  ;;  %v1536_v10 = vld [vmem:[%s1499_s14 + $0x18] sm:$0xff]  ;;  %vm519_vm6 = vcmask 1045509   ;;  %vm521_vm7 = vcmask 1046534   ;;  %vm523_vm8 = vcmask 1047559  }
  0x36   : > { %1096 = vmatpush.msra.mxu1 %v366_v1  ;;  %1098 = vmatpush.msra.mxu3 %v366_v1  ;;  %v1541_v11 = vld [vmem:[%s1499_s14 + $0x38] sm:$0xff]  ;;  %v1169_v12 = vld [vmem:[%s1706_s2] ss:$0 sm:$0xff]  ;;  %vm526_vm9 = vcmask 64512   ;;  %p352_p1 = scmp.lt.s32.totalorder %s1417_s4, 1  ;;  %s1078_s12 = sshll.u32 %s1495_s28, 3 }
  0x37   : > { %411 = vmatpush.msra.mxu0 %v365_v2  ;;  %1100 = vmatpush.msra.mxu2 %v365_v2  ;;  %v1170_v17 = vld [vmem:[%s1707_s3] ss:$0 sm:$0xff]  ;;  %s1089_s17 = sshll.u32 %s1417_s4, 3  ;;  %s942_s15 = scalar_lea.sflag [#allocation5], %s1495_s28 }
  0x38   : > { %1099 = vmatpush.msra.mxu1 %v365_v2  ;;  %1101 = vmatpush.msra.mxu3 %v365_v2  ;;  %s353_s24 = scalar_select %p352_p1, %s1417_s4, 1 }
  0x39   : > { %412 = vmatpush.msra.mxu0 %v364_v3  ;;  %1103 = vmatpush.msra.mxu2 %v364_v3  ;;  %v484_v57 = vstv %s483_s23  ;;  %s956_s23 = scalar_lea.hbm %s1711_s7, %s1089_s17  ;;  %s344_s4 = scalar_lea.vmem [#allocation8], %s1078_s12 }
  0x3a   : > { %1102 = vmatpush.msra.mxu1 %v364_v3  ;;  %1080 = vmatmul.msk.f32.vlgmr.msra.gmra.mxu0 %vm372_vm0, %v1510_v4  ;;  %s1079_s11 = sshll.u32 %s353_s24, 3  ;;  %s958_s24 = sshll.u32 %s344_s4, 4  ;;  %s959_s24 = int_to_ptr.vmem [resolvable:$true] %s958_s24 }
  0x3b   : > { %1084 = vmatmul.msk.f32.vlgmr.msra.gmra.mxu2 %vm372_vm0, %v1513_v5  ;;  %1082 = vmatmul.msk.f32.vlgmr.msra.gmra.mxu1 %vm372_vm0, %v1516_v6  ;;  %s355_s27 = scalar_lea.vmem %s1712_s8, %s1079_s11  ;;  %s960_s11 = sshll.u32 %s956_s23, 4  ;;  %s961_s11 = int_to_ptr.hbm [resolvable:$true] %s960_s11 }
  0x3c   : > { %1104 = vmatpush.msra.mxu3 %v364_v3  ;;  %s1285_s16 = sshra.s32 %s961_s11, 4  ;;  %s1291_s1 = scalar_lea.hbm %s1711_s7, 16  ;;  %s1286_s16 = int_to_ptr.hbm [resolvable:$true] %s1285_s16 }
  0x3d   : > { %1086 = vmatmul.msk.f32.vlgmr.msra.gmra.mxu3 %vm372_vm0, %v1521_v7  ;;  %p1292_p9 = scmp.lt.s32.totalorder %s1286_s16, %s1711_s7 }
  0x42   : > { %1081 = vmatmul.msk.f32.gmra.mxu0 %vm372_vm0, %v1530_v8 }
  0x43   : > { %1085 = vmatmul.msk.f32.gmra.mxu2 %vm372_vm0, %v1533_v9  ;;  %1083 = vmatmul.msk.f32.gmra.mxu1 %vm372_vm0, %v1536_v10 }
  0x45   : > { %1087 = vmatmul.msk.f32.gmra.mxu3 %vm372_vm0, %v1541_v11 }
  0xb7   : > { %v414_v13 = vpop.f32.mrf.mxu0 }
  0xb8   : > { %v415_v14 = vadd.f32 %v1169_v12, %v414_v13  ;;  %v420_v15 = vpop.f32.mrf.mxu1 }
  0xb9   : > { %v421_v16 = vadd.f32 %v1169_v12, %v420_v15 }
  0xba   : > { %1173 = vtanh.f32 %v415_v14 }
  0xbb   : > { %1175 = vtanh.f32 %v421_v16 }
  0xbe   : > { %v426_v18 = vpop.f32.mrf.mxu2 }
  0xbf   : > { %v427_v19 = vadd.f32 %v1169_v12, %v426_v18  ;;  %v417_v20 = vpop.f32.mrf.mxu0 }
  0xc0   : > { %v1174_v21 = vpop.eup %1173  ;;  %v418_v22 = vadd.f32 %v1169_v12, %v417_v20  ;;  %v423_v23 = vpop.f32.mrf.mxu1 }
  0xc1   : > { %v432_v24 = vpop.f32.mrf.mxu3  ;;  %v1176_v25 = vpop.eup %1175  ;;  %1177 = vtanh.f32 %v427_v19  ;;  %v424_v26 = vadd.f32 %v1169_v12, %v423_v23  ;;  %v450_v27 = vmul.f32 %v1174_v21, %v1170_v17 }
  0xc2   : > { %1179 = vtanh.f32 %v418_v22  ;;  %v433_v28 = vadd.f32 %v1169_v12, %v432_v24  ;;  %v452_v29 = vmul.f32 %v1176_v25, %v1170_v17 }
  0xc3   : > { %1181 = vtanh.f32 %v424_v26  ;;  %v459_v30 = vsel %vm458_vm1, %v450_v27, 0.0 }
  0xc4   : > { %460 = vadd.xlane.f32.xlu0 %v459_v30  ;;  %v465_v31 = vsel %vm458_vm1, %v452_v29, 0.0  ;;  %1183 = vtanh.f32 %v433_v28 }
  0xc5   : > { %466 = vadd.xlane.f32.xlu1 %v465_v31 }
  0xc6   : > { %v429_v32 = vpop.f32.mrf.mxu2 }
  0xc7   : > { %v1178_v33 = vpop.eup %1177  ;;  %v430_v34 = vadd.f32 %v1169_v12, %v429_v32 }
  0xc8   : > { %v1180_v35 = vpop.eup %1179  ;;  %v454_v37 = vmul.f32 %v1178_v33, %v1170_v17  ;;  %v1346_v33 = vmov 0  }
  0xc9   : > { %v435_v36 = vpop.f32.mrf.mxu3  ;;  %v1182_v38 = vpop.eup %1181  ;;  %1185 = vtanh.f32 %v430_v34  ;;  %v451_v40 = vmul.f32 %v1180_v35, %v1170_v17  ;;  %1168 = vset.pattern.permute.xlu2 %v1346_v33  ;;  %1167 = vset.pattern.permute.xlu1 %v1346_v33 }
  0xca   : > { %v436_v39 = vadd.f32 %v1169_v12, %v435_v36  ;;  %v471_v41 = vsel %vm458_vm1, %v454_v37, 0.0  ;;  %v453_v42 = vmul.f32 %v1182_v38, %v1170_v17  ;;  %v1184_v44 = vpop.eup %1183  ;;  %1166 = vset.pattern.permute.xlu0 %v1346_v33 }
  0xcb   : > { %472 = vadd.xlane.f32.xlu2 %v471_v41  ;;  %v462_v43 = vsel %vm458_vm1, %v451_v40, 0.0  ;;  %v456_v47 = vmul.f32 %v1184_v44, %v1170_v17 }
  0xcc   : > { %1187 = vtanh.f32 %v436_v39  ;;  %463 = vadd.xlane.f32.xlu0 %v462_v43  ;;  %v468_v45 = vsel %vm458_vm1, %v453_v42, 0.0 }
  0xcd   : > { %469 = vadd.xlane.f32.xlu1 %v468_v45  ;;  %v477_v52 = vsel %vm458_vm1, %v456_v47, 0.0 }
  0xcf   : > { %v1186_v46 = vpop.eup %1185 }
  0xd0   : > { %v455_v48 = vmul.f32 %v1186_v46, %v1170_v17 }
  0xd2   : > { %v1188_v49 = vpop.eup %1187  ;;  %v474_v50 = vsel %vm458_vm1, %v455_v48, 0.0 }
  0xd3   : > { %v457_v51 = vmul.f32 %v1188_v49, %v1170_v17  ;;  %475 = vadd.xlane.f32.xlu2 %v474_v50 }
  0xd4   : > { %478 = vadd.xlane.f32.xlu0 %v477_v52 }
  0xd5   : > { %v480_v53 = vsel %vm458_vm1, %v457_v51, 0.0 }
  0xd6   : > { %481 = vadd.xlane.f32.xlu1 %v480_v53 }
 0x137   : > { %v461_v54 = vpop.xlane.xlu0 %460 }
 0x138   : > { %v467_v55 = vpop.xlane.xlu1 %466  ;;  %v485_v59 = vadd.f32 %v484_v57, %v461_v54 }
 0x139   : > { %v487_v61 = vadd.f32 %v484_v57, %v467_v55 }
 0x13a   : > { %v503_v2 = vperm.slane %v485_v59, %v1563_v58 }
 0x13b   : > { %v505_v12 = vperm.slane %v487_v61, %v1563_v58 }
 0x13e   : > { %v473_v60 = vpop.xlane.xlu2 %472 }
 0x13f   : > { %v464_v62 = vpop.xlane.xlu0 %463  ;;  %v489_v14 = vadd.f32 %v484_v57, %v473_v60 }
 0x140   : > { %v486_v63 = vadd.f32 %v484_v57, %v464_v62  ;;  %v470_v0 = vpop.xlane.xlu1 %469 }
 0x141   : > { %v488_v1 = vadd.f32 %v484_v57, %v470_v0  ;;  %v507_v21 = vperm.slane %v489_v14, %v1563_v58 }
 0x142   : > { %v504_v3 = vperm.slane %v486_v63, %v1563_v58 }
 0x143   : > { %v506_v13 = vperm.slane %v488_v1, %v1563_v58 }
 0x144   : > { %v512_v15 = vsel %vm511_vm2, %v504_v3, %v503_v2 }
 0x145   : > { %v514_v16 = vsel %vm513_vm3, %v505_v12, %v512_v15 }
 0x146   : > { %v476_v17 = vpop.xlane.xlu2 %475  ;;  %v516_v18 = vsel %vm515_vm4, %v506_v13, %v514_v16 }
 0x147   : > { %v490_v19 = vadd.f32 %v484_v57, %v476_v17  ;;  %v479_v20 = vpop.xlane.xlu0 %478  ;;  %v518_v27 = vsel %vm517_vm5, %v507_v21, %v516_v18 }
 0x148   : > { %v491_v22 = vadd.f32 %v484_v57, %v479_v20 }
 0x149   : > { %v482_v23 = vpop.xlane.xlu1 %481  ;;  %v508_v24 = vperm.slane %v490_v19, %v1563_v58 }
 0x14a   : > { %v492_v25 = vadd.f32 %v484_v57, %v482_v23  ;;  %v509_v26 = vperm.slane %v491_v22, %v1563_v58 }
 0x14b   : > { %v520_v29 = vsel %vm519_vm6, %v508_v24, %v518_v27 }
 0x14c   : > { %v510_v28 = vperm.slane %v492_v25, %v1563_v58  ;;  %v522_v30 = vsel %vm521_vm7, %v509_v26, %v520_v29 }
 0x14e   : > { %v524_v31 = vsel %vm523_vm8, %v510_v28, %v522_v30 }
 0x14f   : > { %v527_v32 = vsel %vm526_vm9, %v524_v31, -inf }
 0x150   : > { %528 = vmax.xlane.f32.xlu2 %v527_v32 }
 0x1c3   : > { %v529_v34 = vpop.xlane.xlu2 %528 }
 0x1c4   : > { %v533_v35 = vperm.slane %v529_v34, 2  ;;  %v532_v36 = vperm.slane %v529_v34, 1  ;;  %v531_v37 = vperm.slane %v529_v34, 0  ;;  %v534_v41 = vperm.slane %v529_v34, 3 }
 0x1c5   : > { %v535_v42 = vperm.slane %v529_v34, 4  ;;  %v538_v43 = vperm.slane %v529_v34, 7  ;;  %v536_v51 = vperm.slane %v529_v34, 5  ;;  %v537_v53 = vperm.slane %v529_v34, 6 }
 0x1c6   : > { %v549_v38 = vsub.f32 %v487_v61, %v533_v35  ;;  %v548_v39 = vsub.f32 %v486_v63, %v532_v36  ;;  %v547_v40 = vsub.f32 %v485_v59, %v531_v37  ;;  %v550_v47 = vsub.f32 %v488_v1, %v534_v41 }
 0x1c7   : > { %v551_v48 = vsub.f32 %v489_v14, %v535_v42  ;;  %v554_v49 = vsub.f32 %v492_v25, %v538_v43  ;;  %v552_v59 = vsub.f32 %v490_v19, %v536_v51  ;;  %v553_v60 = vsub.f32 %v491_v22, %v537_v53 }
 0x1c8   : > { %v559_v44 = vmul.f32 1.442695, %v549_v38  ;;  %v557_v45 = vmul.f32 1.442695, %v548_v39  ;;  %v555_v46 = vmul.f32 1.442695, %v547_v40 }
 0x1c9   : > { %v561_v50 = vmul.f32 1.442695, %v550_v47  ;;  %v563_v52 = vmul.f32 1.442695, %v551_v48  ;;  %v569_v55 = vmul.f32 1.442695, %v554_v49 }
 0x1ca   : > { %1189 = vpow2.f32 %v559_v44  ;;  %v565_v61 = vmul.f32 1.442695, %v552_v59  ;;  %v567_v62 = vmul.f32 1.442695, %v553_v60 }
 0x1cb   : > { %1191 = vpow2.f32 %v557_v45 }
 0x1cc   : > { %1193 = vpow2.f32 %v555_v46 }
 0x1cd   : > { %1195 = vpow2.f32 %v561_v50 }
 0x1ce   : > { %1197 = vpow2.f32 %v563_v52 }
 0x1cf   : > { %1199 = vpow2.f32 %v569_v55 }
 0x1d0   : > { %v1581_v54 = vpop.eup %1189  ;;  %1201 = vpow2.f32 %v565_v61 }
 0x1d1   : > { %v1192_v56 = vpop.eup %1191  ;;  %586 = vperm.xlu2 %1168, %v1581_v54   ;;  %1203 = vpow2.f32 %v567_v62 }
 0x1d2   : > { %v1194_v57 = vpop.eup %1193  ;;  %583 = vperm.xlu1 %1167, %v1192_v56  }
 0x1d3   : > { %580 = vperm.xlu0 %1166, %v1194_v57   ;;  %v1196_v63 = vpop.eup %1195 }
 0x1d4   : > { %v1198_v0 = vpop.eup %1197 }
 0x1d5   : > { %v1200_v1 = vpop.eup %1199 }
 0x1d6   : > { %v1202_v2 = vpop.eup %1201 }
 0x1d7   : > { %v1204_v3 = vpop.eup %1203 }
 0x1d9   : > { %589 = vperm.xlu2 %1168, %v1196_v63  }
 0x1da   : > { %592 = vperm.xlu1 %1167, %v1198_v0  }
 0x1db   : > { %601 = vperm.xlu0 %1166, %v1200_v1  }
 0x1e1   : > { %595 = vperm.xlu2 %1168, %v1202_v2  }
 0x1e2   : > { %598 = vperm.xlu1 %1167, %v1204_v3  }
 0x22b   : > { %v587_v12 = vpop.permute.xlu2 %586 }
 0x22c   : > { %v605_v20 = vperm.slane %v587_v12, %v1563_v58 }
 0x233   : > { %v590_v15 = vpop.permute.xlu2 %589 }
 0x234   : > { %v606_v23 = vperm.slane %v590_v15, %v1563_v58 }
 0x23b   : > { %v596_v24 = vpop.permute.xlu2 %595 }
 0x23c   : > { %v608_v28 = vperm.slane %v596_v24, %v1563_v58 }
 0x244   : > { %v584_v13 = vpop.permute.xlu1 %583 }
 0x245   : > { %v581_v14 = vpop.permute.xlu0 %580  ;;  %v604_v16 = vperm.slane %v584_v13, %v1563_v58 }
 0x246   : > { %v603_v17 = vperm.slane %v581_v14, %v1563_v58 }
 0x248   : > { %v611_v18 = vsel %vm511_vm2, %v604_v16, %v603_v17 }
 0x249   : > { %v612_v21 = vsel %vm513_vm3, %v605_v20, %v611_v18 }
 0x24a   : > { %v613_v25 = vsel %vm515_vm4, %v606_v23, %v612_v21 }
 0x24c   : > { %v593_v19 = vpop.permute.xlu1 %592 }
 0x24d   : > { %v607_v22 = vperm.slane %v593_v19, %v1563_v58  ;;  %v602_v27 = vpop.permute.xlu0 %601 }
 0x24e   : > { %v610_v31 = vperm.slane %v602_v27, %v1563_v58 }
 0x24f   : > { %v614_v26 = vsel %vm517_vm5, %v607_v22, %v613_v25 }
 0x250   : > { %v615_v32 = vsel %vm519_vm6, %v608_v28, %v614_v26 }
 0x254   : > { %v599_v29 = vpop.permute.xlu1 %598 }
 0x255   : > { %v609_v30 = vperm.slane %v599_v29, %v1563_v58 }
 0x257   : > { %v616_v33 = vsel %vm521_vm7, %v609_v30, %v615_v32 }
 0x258   : > { %v617_v34 = vsel %vm523_vm8, %v610_v31, %v616_v33 }
 0x259   : > { %v619_v35 = vsel %vm526_vm9, %v617_v34, 0.0 }
 0x25a   : > { %620 = vadd.xlane.f32.xlu2 %v619_v35 }
 0x2cd   : > { %v621_v36 = vpop.xlane.xlu2 %620 }
 0x2ce   : > { %1205 = vrcp.f32 %v621_v36 }
 0x2d4   : > { %v1206_v37 = vpop.eup %1205 }
 0x2d5   : > { %v623_v38 = vmul.f32 %v1206_v37, %v621_v36 }
 0x2d7   : > { %v624_v39 = vsub.f32 2.0, %v623_v38 }
 0x2d9   : > { %v625_v40 = vmul.f32 %v1206_v37, %v624_v39 }
 0x2db   : > { %v628_v41 = vperm.slane %v625_v40, 1  ;;  %v627_v42 = vperm.slane %v625_v40, 0  ;;  %v630_v45 = vperm.slane %v625_v40, 3  ;;  %v629_v46 = vperm.slane %v625_v40, 2 }
 0x2dc   : > { %v632_v49 = vperm.slane %v625_v40, 5  ;;  %v631_v50 = vperm.slane %v625_v40, 4  ;;  %v634_v53 = vperm.slane %v625_v40, 7  ;;  %v633_v55 = vperm.slane %v625_v40, 6 }
 0x2dd   : > { %v644_v43 = vmul.f32 %v1192_v56, %v628_v41  ;;  %v643_v44 = vmul.f32 %v1194_v57, %v627_v42  ;;  %v646_v47 = vmul.f32 %v1196_v63, %v630_v45  ;;  %v645_v48 = vmul.f32 %v1581_v54, %v629_v46 }
 0x2de   : > { %v648_v51 = vmul.f32 %v1202_v2, %v632_v49  ;;  %v647_v52 = vmul.f32 %v1198_v0, %v631_v50  ;;  %v650_v59 = vmul.f32 %v1200_v1, %v634_v53  ;;  %v649_v56 = vmul.f32 %v1204_v3, %v633_v55 }
 0x2df   : > { %663 = vperm.xlu0 %1166, %v644_v43   ;;  %660 = vperm.xlu1 %1167, %v643_v44  }
 0x2e7   : > { %669 = vperm.xlu0 %1166, %v646_v47   ;;  %666 = vperm.xlu1 %1167, %v645_v48  }
 0x2ef   : > { %675 = vperm.xlu0 %1166, %v648_v51   ;;  %672 = vperm.xlu1 %1167, %v647_v52  }
 0x2f7   : > { %681 = vperm.xlu0 %1166, %v650_v59   ;;  %678 = vperm.xlu1 %1167, %v649_v56  }
 0x351   : > { %v664_v57 = vpop.permute.xlu0 %663  ;;  %v661_v60 = vpop.permute.xlu1 %660 }
 0x352   : > { %v709_v61 = vmul.f32 %v664_v57, %v1530_v8  ;;  %v708_v54 = vmul.f32 %v661_v60, %v1510_v4  ;;  %v684_v19 = vperm.slane %v664_v57, %v1563_v58  ;;  %v683_v20 = vperm.slane %v661_v60, %v1563_v58 }
 0x354   : > { %v723_v62 = vsel %vm372_vm0, %v709_v61, 0.0  ;;  %v716_v63 = vsel %vm372_vm0, %v708_v54, 0.0  ;;  %v691_v29 = vsel %vm511_vm2, %v684_v19, %v683_v20 }
 0x355   : > { %v724_v2 = vrot.slane %v723_v62, 4  ;;  %v717_v0 = vrot.slane %v716_v63, 4 }
 0x357   : > { %v725_v14 = vadd.f32 %v724_v2, %v723_v62  ;;  %v718_v15 = vadd.f32 %v717_v0, %v716_v63 }
 0x359   : > { %v670_v12 = vpop.permute.xlu0 %669  ;;  %v667_v13 = vpop.permute.xlu1 %666  ;;  %v726_v18 = vrot.slane %v725_v14, 2  ;;  %v719_v21 = vrot.slane %v718_v15, 2 }
 0x35a   : > { %v711_v1 = vmul.f32 %v670_v12, %v1536_v10  ;;  %v710_v3 = vmul.f32 %v667_v13, %v1516_v6  ;;  %v685_v23 = vperm.slane %v667_v13, %v1563_v58  ;;  %v686_v31 = vperm.slane %v670_v12, %v1563_v58 }
 0x35b   : > { %v727_v26 = vadd.f32 %v726_v18, %v725_v14  ;;  %v720_v30 = vadd.f32 %v719_v21, %v718_v15 }
 0x35c   : > { %v737_v16 = vsel %vm372_vm0, %v711_v1, 0.0  ;;  %v730_v8 = vsel %vm372_vm0, %v710_v3, 0.0  ;;  %v692_v32 = vsel %vm513_vm3, %v685_v23, %v691_v29  ;;  %v1347_v29 = vmov 32.0  }
 0x35d   : > { %v738_v4 = vrot.slane %v737_v16, 4  ;;  %v731_v17 = vrot.slane %v730_v8, 4  ;;  %v693_v41 = vsel %vm515_vm4, %v686_v31, %v692_v32  ;;  %v721_v43 = vrot.slane %v720_v30, 1 }
 0x35e   : > { %1207 = vrcp.f32 %v1347_v29 }
 0x35f   : > { %v732_v22 = vadd.f32 %v731_v17, %v730_v8  ;;  %v739_v6 = vadd.f32 %v738_v4, %v737_v16  ;;  %v722_v60 = vadd.f32 %v721_v43, %v720_v30 }
 0x361   : > { %v733_v10 = vrot.slane %v732_v22, 2  ;;  %v676_v24 = vpop.permute.xlu0 %675  ;;  %v673_v25 = vpop.permute.xlu1 %672  ;;  %v740_v36 = vrot.slane %v739_v6, 2 }
 0x362   : > { %v713_v27 = vmul.f32 %v676_v24, %v1533_v9  ;;  %v712_v28 = vmul.f32 %v673_v25, %v1513_v5  ;;  %v687_v34 = vperm.slane %v673_v25, %v1563_v58  ;;  %v728_v5 = vrot.slane %v727_v26, 1 }
 0x363   : > { %v734_v37 = vadd.f32 %v733_v10, %v732_v22  ;;  %v688_v39 = vperm.slane %v676_v24, %v1563_v58  ;;  %v741_v45 = vadd.f32 %v740_v36, %v739_v6 }
 0x364   : > { %v751_v33 = vsel %vm372_vm0, %v713_v27, 0.0  ;;  %v744_v35 = vsel %vm372_vm0, %v712_v28, 0.0  ;;  %v694_v44 = vsel %vm517_vm5, %v687_v34, %v693_v41  ;;  %v729_v59 = vadd.f32 %v728_v5, %v727_v26  ;;  %v1208_v30 = vpop.eup %1207 }
 0x365   : > { %v752_v9 = vrot.slane %v751_v33, 4  ;;  %v745_v38 = vrot.slane %v744_v35, 4  ;;  %v735_v46 = vrot.slane %v734_v37, 1  ;;  %v695_v57 = vsel %vm519_vm6, %v688_v39, %v694_v44 }
 0x366   : > { %v780_v1 = vsel %vm511_vm2, %v729_v59, %v722_v60  ;;  %v792_v31 = vmul.f32 32.0, %v1208_v30  ;;  %vm796_vm10 = vweird.f32 %v1208_v30 }
 0x367   : > { %v753_v40 = vadd.f32 %v752_v9, %v751_v33  ;;  %v746_v42 = vadd.f32 %v745_v38, %v744_v35  ;;  %v736_v2 = vadd.f32 %v735_v46, %v734_v37 }
 0x368   : > { %v793_v32 = vsub.f32 1.0, %v792_v31 }
 0x369   : > { %v754_v47 = vrot.slane %v753_v40, 2  ;;  %v747_v48 = vrot.slane %v746_v42, 2  ;;  %v682_v49 = vpop.permute.xlu0 %681  ;;  %v679_v50 = vpop.permute.xlu1 %678  ;;  %v781_v17 = vsel %vm513_vm3, %v736_v2, %v780_v1 }
 0x36a   : > { %v690_v51 = vperm.slane %v682_v49, %v1563_v58  ;;  %v715_v52 = vmul.f32 %v682_v49, %v1541_v11  ;;  %v689_v53 = vperm.slane %v679_v50, %v1563_v58  ;;  %v714_v55 = vmul.f32 %v679_v50, %v1521_v7 }
 0x36b   : > { %v748_v56 = vadd.f32 %v747_v48, %v746_v42  ;;  %v742_v11 = vrot.slane %v741_v45, 1  ;;  %v755_v63 = vadd.f32 %v754_v47, %v753_v40  ;;  %v794_v33 = vmul.f32 %v1208_v30, %v793_v32 }
 0x36c   : > { %v765_v61 = vsel %vm372_vm0, %v715_v52, 0.0  ;;  %v696_v54 = vsel %vm521_vm7, %v689_v53, %v695_v57  ;;  %v758_v62 = vsel %vm372_vm0, %v714_v55, 0.0 }
 0x36d   : > { %v766_v58 = vrot.slane %v765_v61, 4  ;;  %v697_v7 = vsel %vm523_vm8, %v690_v51, %v696_v54  ;;  %v749_v0 = vrot.slane %v748_v56, 1  ;;  %v759_v12 = vrot.slane %v758_v62, 4 }
 0x36e   : > { %699 = vst.msk [vmem:[%s355_s27] sm:$0xff] %vm526_vm9, %v697_v7  ;;  %v743_v3 = vadd.f32 %v742_v11, %v741_v45  ;;  %v756_v15 = vrot.slane %v755_v63, 1  ;;  %v795_v34 = vadd.f32 %v1208_v30, %v794_v33  ;;  %s1287_s27 = scalar_lea.hbm %s1286_s16, 8 }
 0x36f   : > { %v767_v13 = vadd.f32 %v766_v58, %v765_v61  ;;  %v760_v14 = vadd.f32 %v759_v12, %v758_v62  ;;  %v750_v8 = vadd.f32 %v749_v0, %v748_v56  ;;  %p1288_p4 = scmp.ne.s32.totalorder %s1286_s16, %s1287_s27  ;;  %p1293_p2 = scmp.lt.s32.totalorder %s1291_s1, %s1287_s27 }
 0x370   : > { %v757_v20 = vadd.f32 %v756_v15, %v755_v63  ;;  %v782_v22 = vsel %vm515_vm4, %v743_v3, %v781_v17  ;;  %v797_v35 = vsel %vm796_vm10, %v1208_v30, %v795_v34 }
 0x371   : > { %v768_v16 = vrot.slane %v767_v13, 2  ;;  %v761_v4 = vrot.slane %v760_v14, 2  ;;  %v783_v6 = vsel %vm517_vm5, %v750_v8, %v782_v22  ;;  %p1289_p8 = pnand %p1288_p4, %p1465_p3  ;;  %p1294_p10 = por %p1293_p2, %p1292_p9 }
 0x372   : > { %v784_v25 = vsel %vm519_vm6, %v757_v20, %v783_v6 }
 0x373   : > { %v769_v18 = vadd.f32 %v768_v16, %v767_v13  ;;  %v762_v19 = vadd.f32 %v761_v4, %v760_v14  ;;  %p1290_p11 = pneg %p1289_p8 }
 0x375   : > { %v770_v21 = vrot.slane %v769_v18, 1  ;;  %v763_v23 = vrot.slane %v762_v19, 1  ;;  %p1295_p12 = pnand %p1294_p10, %p1290_p11 }
 0x377   : > { %v771_v10 = vadd.f32 %v770_v21, %v769_v18  ;;  %v764_v24 = vadd.f32 %v763_v23, %v762_v19  ;;  %v1171_v23 = vld [vmem:[%s1709_s5] ss:$0 sm:$0xff] }
 0x379   : > { %v785_v26 = vsel %vm521_vm7, %v764_v24, %v784_v25 }
 0x37a   : > { %v786_v27 = vsel %vm523_vm8, %v771_v10, %v785_v26 }
 0x37b   : > { %v788_v28 = vsel %vm372_vm0, %v786_v27, 0.0 }
 0x37c   : > { %789 = vadd.xlane.f32.xlu1 %v788_v28 }
 0x3ef   : > { %v790_v36 = vpop.xlane.xlu1 %789 }
 0x3f0   : > { %v798_v37 = vmul.f32 %v797_v35, %v790_v36 }
 0x3f2   : > { %v800_v9 = vrot.slane %v798_v37, 1  ;;  %v801_v38 = vrot.slane %v798_v37, 2  ;;  %v802_v5 = vrot.slane %v798_v37, 3  ;;  %v803_v39 = vrot.slane %v798_v37, 4 }
 0x3f3   : > { %v804_v40 = vrot.slane %v798_v37, 5  ;;  %v805_v41 = vrot.slane %v798_v37, 6  ;;  %v806_v42 = vrot.slane %v798_v37, 7  ;;  %v815_v43 = vsub.f32 %v722_v60, %v798_v37 }
 0x3f4   : > { %v816_v44 = vsub.f32 %v729_v59, %v800_v9  ;;  %v817_v45 = vsub.f32 %v736_v2, %v801_v38  ;;  %v818_v46 = vsub.f32 %v743_v3, %v802_v5  ;;  %v819_v47 = vsub.f32 %v750_v8, %v803_v39 }
 0x3f5   : > { %v820_v48 = vsub.f32 %v757_v20, %v804_v40  ;;  %v821_v49 = vsub.f32 %v764_v24, %v805_v41  ;;  %v822_v50 = vsub.f32 %v771_v10, %v806_v42  ;;  %v823_v56 = vmul.f32 %v815_v43, %v815_v43  ;;  %v1172_v41 = vld [vmem:[%s1710_s6] ss:$0 sm:$0xff] }
 0x3f6   : > { %v824_v51 = vmul.f32 %v816_v44, %v816_v44  ;;  %v825_v52 = vmul.f32 %v817_v45, %v817_v45  ;;  %v826_v53 = vmul.f32 %v818_v46, %v818_v46  ;;  %v827_v55 = vmul.f32 %v819_v47, %v819_v47 }
 0x3f7   : > { %v828_v57 = vmul.f32 %v820_v48, %v820_v48  ;;  %v829_v62 = vmul.f32 %v821_v49, %v821_v49  ;;  %v830_v11 = vmul.f32 %v822_v50, %v822_v50 }
 0x3f8   : > { %v839_v61 = vrot.slane %v824_v51, 7  ;;  %v841_v54 = vrot.slane %v825_v52, 6  ;;  %v843_v60 = vrot.slane %v826_v53, 5  ;;  %v845_v58 = vrot.slane %v827_v55, 4 }
 0x3f9   : > { %v847_v2 = vrot.slane %v828_v57, 3  ;;  %v849_v12 = vrot.slane %v829_v62, 2  ;;  %v851_v14 = vrot.slane %v830_v11, 1 }
 0x3fa   : > { %v840_v63 = vsel %vm511_vm2, %v839_v61, %v823_v56 }
 0x3fb   : > { %v842_v59 = vsel %vm513_vm3, %v841_v54, %v840_v63 }
 0x3fc   : > { %v844_v7 = vsel %vm515_vm4, %v843_v60, %v842_v59 }
 0x3fd   : > { %v846_v0 = vsel %vm517_vm5, %v845_v58, %v844_v7 }
 0x3fe   : > { %v848_v13 = vsel %vm519_vm6, %v847_v2, %v846_v0 }
 0x3ff   : > { %v850_v1 = vsel %vm521_vm7, %v849_v12, %v848_v13 }
 0x400   : > { %v852_v3 = vsel %vm523_vm8, %v851_v14, %v850_v1 }
 0x401   : > { %v854_v15 = vsel %vm372_vm0, %v852_v3, 0.0 }
 0x402   : > { %855 = vadd.xlane.f32.xlu0 %v854_v15 }
 0x475   : > { %v856_v16 = vpop.xlane.xlu0 %855 }
 0x476   : > { %v857_v8 = vmul.f32 %v856_v16, %v797_v35 }
 0x478   : > { %v858_v4 = vadd.f32 1e-05, %v857_v8 }
 0x47a   : > { %1209 = vrsqrt.f32 %v858_v4  ;;  %vm865_vm12 = vweird.f32 %v858_v4 }
 0x480   : > { %v1210_v17 = vpop.eup %1209 }
 0x481   : > { %v860_v18 = vmul.f32 %v1210_v17, %v858_v4  ;;  %vm866_vm11 = vweird.f32 %v1210_v17 }
 0x482   : > { %vm867_vm13 = vmor %vm865_vm12, %vm866_vm11 }
 0x483   : > { %v861_v19 = vmul.f32 %v1210_v17, %v860_v18 }
 0x485   : > { %v862_v20 = vmul.f32 0.5, %v861_v19 }
 0x487   : > { %v863_v21 = vsub.f32 1.5, %v862_v20 }
 0x489   : > { %v864_v22 = vmul.f32 %v1210_v17, %v863_v21 }
 0x48b   : > { %v868_v6 = vsel %vm867_vm13, %v1210_v17, %v864_v22 }
 0x48c   : > { %v870_v10 = vrot.slane %v868_v6, 1  ;;  %v871_v24 = vrot.slane %v868_v6, 2  ;;  %v872_v25 = vrot.slane %v868_v6, 3  ;;  %v873_v26 = vrot.slane %v868_v6, 4 }
 0x48d   : > { %v874_v27 = vrot.slane %v868_v6, 5  ;;  %v885_v28 = vmul.f32 %v868_v6, %v815_v43  ;;  %v875_v29 = vrot.slane %v868_v6, 6  ;;  %v876_v30 = vrot.slane %v868_v6, 7 }
 0x48e   : > { %v886_v31 = vmul.f32 %v870_v10, %v816_v44  ;;  %v887_v32 = vmul.f32 %v871_v24, %v817_v45  ;;  %v888_v33 = vmul.f32 %v872_v25, %v818_v46  ;;  %v889_v34 = vmul.f32 %v873_v26, %v819_v47 }
 0x48f   : > { %v897_v35 = vmul.f32 %v1171_v23, %v885_v28  ;;  %v890_v36 = vmul.f32 %v874_v27, %v820_v48  ;;  %v891_v37 = vmul.f32 %v875_v29, %v821_v49  ;;  %v892_v9 = vmul.f32 %v876_v30, %v822_v50 }
 0x490   : > { %v898_v38 = vmul.f32 %v1171_v23, %v886_v31  ;;  %v899_v5 = vmul.f32 %v1171_v23, %v887_v32  ;;  %v900_v39 = vmul.f32 %v1171_v23, %v888_v33  ;;  %v901_v40 = vmul.f32 %v1171_v23, %v889_v34 }
 0x491   : > { %v902_v42 = vmul.f32 %v1171_v23, %v890_v36  ;;  %v903_v43 = vmul.f32 %v1171_v23, %v891_v37  ;;  %v904_v44 = vmul.f32 %v1171_v23, %v892_v9  ;;  %v909_v48 = vadd.f32 %v1172_v41, %v897_v35 }
 0x492   : > { %v910_v45 = vadd.f32 %v1172_v41, %v898_v38  ;;  %v911_v46 = vadd.f32 %v1172_v41, %v899_v5  ;;  %v912_v47 = vadd.f32 %v1172_v41, %v900_v39  ;;  %v913_v51 = vadd.f32 %v1172_v41, %v901_v40 }
 0x493   : > { %v914_v49 = vadd.f32 %v1172_v41, %v902_v42  ;;  %v915_v53 = vadd.f32 %v1172_v41, %v903_v43  ;;  %v916_v55 = vadd.f32 %v1172_v41, %v904_v44 }
 0x494   : > { %v925_v50 = vrot.slane %v910_v45, 7  ;;  %v927_v52 = vrot.slane %v911_v46, 6  ;;  %v929_v57 = vrot.slane %v912_v47, 5  ;;  %v931_v54 = vrot.slane %v913_v51, 4 }
 0x495   : > { %v933_v11 = vrot.slane %v914_v49, 3  ;;  %v935_v60 = vrot.slane %v915_v53, 2  ;;  %v937_v58 = vrot.slane %v916_v55, 1 }
 0x496   : > { %v926_v56 = vsel %vm511_vm2, %v925_v50, %v909_v48 }
 0x497   : > { %v928_v61 = vsel %vm513_vm3, %v927_v52, %v926_v56 }
 0x498   : > { %v930_v62 = vsel %vm515_vm4, %v929_v57, %v928_v61 }
 0x499   : > { %v932_v63 = vsel %vm517_vm5, %v931_v54, %v930_v62 }
 0x49a   : > { %v934_v59 = vsel %vm519_vm6, %v933_v11, %v932_v63 }
 0x49b   : > { %v936_v7 = vsel %vm521_vm7, %v935_v60, %v934_v59 }
 0x49c   : > { %v938_v2 = vsel %vm523_vm8, %v937_v58, %v936_v7 }
 0x49d   : > { %940 = vst.msk [vmem:[%s344_s4] sm:$0xff] %vm372_vm0, %v938_v2 }
 0x49e   : > { %1298 = shalt.err (!%p1295_p12)
}
 0x49f   : > { %1111 = dma.vmem_to_hbm [thread:$0]  (%p1465_p3), %s959_s24, 128, %s961_s11, %s942_s15  }
 0x4a0 PF: > { %s975_s28 = sand.u32 1, %s1329_s29   ;;  %p1724_p13 = scmp.ge.s32.totalorder %s1341_s10, 2 }
 0x4a1   : > { %s976_s17 = scalar_lea.sflag [#allocation5], %s975_s28 }
 0x4a2   : > { %p1122_p0 = pnand %p1724_p13, %p1431_p6 }
 0x4a4   : > { %p1123_p5 = pneg %p1122_p0 }
 0x4a6   : > { %1324 = dma.done.wait (%p1123_p5), %s976_s17, 128  }
 0x4a7   : > { %1326 = vsyncadd (%p1123_p5), %s976_s17, 4294967168  ;;  %p24_p7 = scmp.ge.s32.totalorder %s1449_s20, 4   ;;  %s1725_s29 = smov %s1333_s30 }
 0x4a8   : > { %s1726_s30 = smov %s1337_s9  ;;  %s1727_s9 = smov %s1461_s25 }
 0x4a9   : > { %s1728_s10 = smov %s1449_s20  ;;  %26 = sbr.rel (!%p24_p7) target bundleno = 9 (0x9), region = 109 }
 0x4ae   :  { %989 = vsyncpa [#allocation4], 1 }
 0x4af   :  { %991 = vsyncpa [#allocation4 + $0x1], 1 }
 0x4b0   :  { %992 = vsyncpa [#allocation7], 1 }
 0x4b1   :  { %993 = vsyncpa [#allocation5], 1 }
 0x4b2   :  { %995 = vsyncpa [#allocation5 + $0x1], 1 }

</bundles_post_ra>
